<compile_context>
chip_gen: v6e
topology: v6e:2x2x1
jax: 0.10.0
libtpu: 0.0.40
codegen_flags: <defaults>
</compile_context>

<pallas_src>
import functools

import jax
import jax.numpy as jnp
from jax import lax
from jax.experimental import pallas as pl
from jax.experimental.pallas import tpu as pltpu


_ROW_TILE = 512                      # default output-tile edge (multiple of 128)


# --------------------------------------------------------------------------
# Small helpers
# --------------------------------------------------------------------------
def _round_up(x: int, m: int) -> int:
    return -(-x // m) * m


def _pick_row_tile(dim: int) -> int:
    """Largest 128-aligned tile <= _ROW_TILE that can cover `dim` after padding."""
    return min(_ROW_TILE, _round_up(dim, 128))


def _col_tile(row_tile: int, d: int) -> int:
    """Lane-axis tile: halve for very large D so double-buffered (tile, D)
    operands + three (ti, tj) f32 target tiles stay well under v7x's 64 MiB."""
    if d >= 4096 and row_tile % 256 == 0:
        return row_tile // 2
    return row_tile


def _pad2d(x, rows: int, cols: int):
    pr, pc = rows - x.shape[0], cols - x.shape[1]
    if pr == 0 and pc == 0:
        return x
    return jnp.pad(x, ((0, pr), (0, pc)))


@functools.lru_cache(maxsize=1)
def _vmem_limit_bytes() -> int:
    """3/4 of physical VMEM (per review: ~64-96 MiB on v5e/v6e, ~48 MiB on v7x)."""
    try:
        cap = getattr(pltpu.get_tpu_info(), "vmem_capacity_bytes", None)
        if cap:
            return int(min(96 * 1024 * 1024, (cap * 3) // 4))
    except Exception:
        pass
    return 48 * 1024 * 1024


# --------------------------------------------------------------------------
# Kernels
# --------------------------------------------------------------------------
def _normalize_rows_kernel(x_ref, o_ref, *, n_valid, block_rows):
    # y = x * rsqrt(sum(x*x, axis=1)); rows >= n_valid (padding) are zeroed so
    # they contribute exactly 0 to every downstream partial sum.
    x = x_ref[...].astype(jnp.float32)
    inv_norm = lax.rsqrt(jnp.sum(x * x, axis=1, keepdims=True))
    y = x * inv_norm
    row = (pl.program_id(0) * block_rows
           + lax.broadcasted_iota(jnp.int32, (block_rows, 1), 0))
    y = jnp.where(row < n_valid, y, 0.0)
    o_ref[...] = y.astype(o_ref.dtype)


def _pair_loss_kernel(xi_ref, xj_ref, s_ref, out_ref):
    # Rows are unit-norm: cosine-similarity tile is a plain matmul.
    # Contract the feature axis of both operands -> no transpose materialized.
    sim = lax.dot_general(
        xi_ref[...], xj_ref[...],
        dimension_numbers=(((1,), (1,)), ((), ())),
        preferred_element_type=jnp.float32)
    d = sim - s_ref[...].astype(jnp.float32)
    out_ref[0, 0] = jnp.sum(d * d)


def _cross_loss_kernel(e_ref, f_ref, dti_ref, cof_ref, dti2_ref,
                       s3_ref, sc_ref, s4_ref):
    # Fused los3/los4 partials over a single SN3 tile.  d4 (and sum(cof)) are
    # reduced before d3 is formed, so at most sim + one (ti,tj) f32 temporary
    # is live -> less compiler scratch (matters on v7x's 64 MiB VMEM).
    sim = lax.dot_general(
        e_ref[...], f_ref[...],
        dimension_numbers=(((1,), (1,)), ((), ())),
        preferred_element_type=jnp.float32)
    d4 = sim - dti2_ref[...].astype(jnp.float32)
    s4_ref[0, 0] = jnp.sum(d4 * d4)
    cof = cof_ref[...].astype(jnp.float32)
    sc_ref[0, 0] = jnp.sum(cof)
    d3 = sim - dti_ref[...].astype(jnp.float32)
    s3_ref[0, 0] = jnp.sum(d3 * d3 * cof)


# --------------------------------------------------------------------------
# pallas_call wrappers
# --------------------------------------------------------------------------
def _normalize_rows(x_padded, n_valid, row_tile, out_dtype):
    np_, d = x_padded.shape
    kernel = functools.partial(
        _normalize_rows_kernel, n_valid=n_valid, block_rows=row_tile)
    return pl.pallas_call(
        kernel,
        out_shape=jax.ShapeDtypeStruct((np_, d), out_dtype),
        grid=(np_ // row_tile,),
        in_specs=[pl.BlockSpec((row_tile, d), lambda i: (i, 0))],
        out_specs=pl.BlockSpec((row_tile, d), lambda i: (i, 0)),
        compiler_params=pltpu.CompilerParams(
            dimension_semantics=("parallel",),
            vmem_limit_bytes=_vmem_limit_bytes()),
    )(x_padded)


def _pair_loss_sum(x_n, s_padded, ti, tj):
    """sum((x_n @ x_n^T - s)^2) as a sum of per-tile partials."""
    np_, d = x_n.shape
    gi, gj = np_ // ti, np_ // tj
    itm = x_n.dtype.itemsize
    cost = pl.CostEstimate(
        flops=int(2 * np_ * np_ * d),
        transcendentals=0,
        # i-operand streamed once, j-operand re-streamed gi times, target once.
        bytes_accessed=int((1 + gi) * np_ * d * itm
                           + s_padded.size * s_padded.dtype.itemsize))
    partials = pl.pallas_call(
        _pair_loss_kernel,
        out_shape=jax.ShapeDtypeStruct((gi, gj), jnp.float32),
        grid=(gi, gj),
        in_specs=[
            pl.BlockSpec((ti, d), lambda i, j: (i, 0)),   # hoisted across j
            pl.BlockSpec((tj, d), lambda i, j: (j, 0)),
            pl.BlockSpec((ti, tj), lambda i, j: (i, j)),
        ],
        out_specs=pl.BlockSpec((1, 1), lambda i, j: (i, j),
                               memory_space=pltpu.MemorySpace.SMEM),
        compiler_params=pltpu.CompilerParams(
            dimension_semantics=("parallel", "parallel"),
            vmem_limit_bytes=_vmem_limit_bytes()),
        cost_estimate=cost,
    )(x_n, x_n, s_padded)
    return jnp.sum(partials)


def _cross_loss_sums(e_n, f_n, dti, cof, dti2, ti, tj):
    """Tile partials of sum((SN3-dti)^2*cof), sum(cof), sum((SN3-dti2)^2)."""
    np_, d = e_n.shape
    mp_ = f_n.shape[0]
    gi, gj = np_ // ti, mp_ // tj
    itm = e_n.dtype.itemsize
    cost = pl.CostEstimate(
        flops=int(2 * np_ * mp_ * d),
        transcendentals=0,
        bytes_accessed=int(np_ * d * itm + gi * mp_ * d * itm
                           + (dti.size + cof.size + dti2.size) * 4))
    scalar_out = pl.BlockSpec((1, 1), lambda i, j: (i, j),
                              memory_space=pltpu.MemorySpace.SMEM)
    s3, sc, s4 = pl.pallas_call(
        _cross_loss_kernel,
        out_shape=(jax.ShapeDtypeStruct((gi, gj), jnp.float32),
                   jax.ShapeDtypeStruct((gi, gj), jnp.float32),
                   jax.ShapeDtypeStruct((gi, gj), jnp.float32)),
        grid=(gi, gj),
        in_specs=[
            pl.BlockSpec((ti, d), lambda i, j: (i, 0)),   # hoisted across j
            pl.BlockSpec((tj, d), lambda i, j: (j, 0)),
            pl.BlockSpec((ti, tj), lambda i, j: (i, j)),
            pl.BlockSpec((ti, tj), lambda i, j: (i, j)),
            pl.BlockSpec((ti, tj), lambda i, j: (i, j)),
        ],
        out_specs=(scalar_out, scalar_out, scalar_out),
        compiler_params=pltpu.CompilerParams(
            dimension_semantics=("parallel", "parallel"),
            vmem_limit_bytes=_vmem_limit_bytes()),
        cost_estimate=cost,
    )(e_n, f_n, dti, cof, dti2)
    return jnp.sum(s3), jnp.sum(sc), jnp.sum(s4)


# --------------------------------------------------------------------------
# Public entry point
# --------------------------------------------------------------------------
@functools.partial(jax.jit, static_argnames=("use_bf16_rows",))
def aefs_loss(e, sr, f, sp, dti, cof, dti2, use_bf16_rows=False):
    """Pallas implementation of AEFSLoss.forward. Returns a scalar float32."""
    n, d = e.shape
    m = f.shape[0]

    ti_n = _pick_row_tile(n)
    ti_m = _pick_row_tile(m)
    np_ = _round_up(n, ti_n)
    mp_ = _round_up(m, ti_m)

    rows_dtype = jnp.bfloat16 if use_bf16_rows else e.dtype

    # Pad to tile multiples (zeros); padded rows are zeroed by the normalize
    # kernel so they contribute exactly 0 to every sum (incl. sum(cof)).
    e_p = _pad2d(e, np_, d)
    f_p = _pad2d(f, mp_, d)
    sr_p = _pad2d(sr, np_, np_)
    sp_p = _pad2d(sp, mp_, mp_)
    dti_p = _pad2d(dti, np_, mp_)
    cof_p = _pad2d(cof, np_, mp_)
    dti2_p = _pad2d(dti2, np_, mp_)

    e_n = _normalize_rows(e_p, n, ti_n, rows_dtype)
    f_n = _normalize_rows(f_p, m, ti_m, rows_dtype)

    tj_n = _col_tile(ti_n, d)
    tj_m = _col_tile(ti_m, d)

    sum1 = _pair_loss_sum(e_n, sr_p, ti_n, tj_n)                     # (N,N) term
    sum2 = _pair_loss_sum(f_n, sp_p, ti_m, tj_m)                     # (M,M) term
    sum3, cof_sum, sum4 = _cross_loss_sums(e_n, f_n, dti_p, cof_p, dti2_p,
                                           ti_n, tj_m)               # (N,M) terms

    # Scalar epilogue (4 divides + weighted sum) — negligible, done in JAX.
    los1 = sum1 / (n * n)
    los2 = sum2 / (m * m)
    los3 = sum3 / cof_sum
    los4 = sum4 / (n * m)
    return 1.0 * los3 + 2.0 * los1 + 2.0 * los2 + 2.0 * los4


# --------------------------------------------------------------------------
# Pure-JAX reference (mirrors the PyTorch forward) + self-test
# --------------------------------------------------------------------------
def _reference(e, sr, f, sp, dti, cof, dti2):
    hp = jax.lax.Precision.HIGHEST
    ne = jnp.sqrt(jnp.sum(e * e, axis=1, keepdims=True))
    nf = jnp.sqrt(jnp.sum(f * f, axis=1, keepdims=True))
    SN = jnp.dot(e, e.T, precision=hp) / (ne * ne.T)
    los1 = jnp.sum((SN - sr) ** 2) / SN.shape[0] ** 2
    SNp = jnp.dot(f, f.T, precision=hp) / (nf * nf.T)
    los2 = jnp.sum((SNp - sp) ** 2) / SNp.shape[0] ** 2
    SN3 = jnp.dot(e, f.T, precision=hp) / (ne * nf.T)
    los3 = jnp.sum((SN3 - dti) ** 2 * cof) / jnp.sum(cof)
    los4 = jnp.sum((SN3 - dti2) ** 2) / (SN3.shape[0] * SN3.shape[1])
    return 1.0 * los3 + 2.0 * los1 + 2.0 * los2 + 2.0 * los4


if __name__ == "__main__":
    def make_inputs(key, n, m, d):
        ks = jax.random.split(key, 7)
        e = jax.random.normal(ks[0], (n, d), dtype=jnp.float32)
        f = jax.random.normal(ks[1], (m, d), dtype=jnp.float32)
        sr = jax.random.normal(ks[2], (n, n), dtype=jnp.float32)
        sp = jax.random.normal(ks[3], (m, m), dtype=jnp.float32)
        dti = jax.random.normal(ks[4], (n, m), dtype=jnp.float32)
        cof = jax.random.uniform(ks[5], (n, m), dtype=jnp.float32) + 0.1
        dti2 = jax.random.normal(ks[6], (n, m), dtype=jnp.float32)
        return e, sr, f, sp, dti, cof, dti2

    k1, k2 = jax.random.split(jax.random.PRNGKey(0))

    # Small shapes.
    args1 = make_inputs(k1, 8, 16, 32)
    out1 = aefs_loss(*args1, use_bf16_rows=False)
    jax.block_until_ready(out1)
    ref1 = _reference(*args1)
    assert jnp.allclose(out1, ref1, rtol=2e-3, atol=2e-3), (out1, ref1)

    # Non-tile-multiple shapes exercise the pad-and-zero tail handling.
    args2 = make_inputs(k2, 200, 72, 96)
    out2 = aefs_loss(*args2, use_bf16_rows=False)
    jax.block_until_ready(out2)
    ref2 = _reference(*args2)
    assert jnp.allclose(out2, ref2, rtol=2e-3, atol=2e-3), (out2, ref2)

    # bf16 normalized-row fast path (looser tolerance, per review note).
    out3 = aefs_loss(*args1, use_bf16_rows=True)
    jax.block_until_ready(out3)
    assert jnp.allclose(out3, ref1, rtol=5e-2, atol=5e-2), (out3, ref1)

    print("KERNEL_OK")
</pallas_src>

<mosaic_0001>
module attributes {stable_mosaic.version = 11 : i64} {
  func.func @_normalize_rows_kernel(%arg0: i32, %arg1: memref<128x32xf32, #tpu.memory_space<vmem>>, %arg2: memref<128x32xf32, #tpu.memory_space<vmem>>) attributes {dimension_semantics = [#tpu.dimension_semantics<parallel>], iteration_bounds = array<i64: 1>, scalar_prefetch = 0 : i64, scratch_operands = 0 : i64, tpu.core_type = #tpu.core_type<tc>, window_params = [{transform_indices = @transform_0, window_bounds = array<i64: 128, 32>}, {transform_indices = @transform_1, window_bounds = array<i64: 128, 32>}]} {
    %c0 = arith.constant 0 : index
    %c0_0 = arith.constant 0 : index
    %0 = vector.load %arg1[%c0, %c0_0] : memref<128x32xf32, #tpu.memory_space<vmem>>, vector<128x32xf32>
    %1 = arith.mulf %0, %0 : vector<128x32xf32>
    %cst = arith.constant dense<0.000000e+00> : vector<128xf32>
    %2 = vector.multi_reduction <add>, %1, %cst [1] : vector<128x32xf32> to vector<128xf32>
    %3 = vector.shape_cast %2 : vector<128xf32> to vector<128x1xf32>
    %4 = math.rsqrt %3 : vector<128x1xf32>
    %5 = vector.broadcast %4 : vector<128x1xf32> to vector<128x32xf32>
    %6 = arith.mulf %0, %5 : vector<128x32xf32>
    %c128_i32 = arith.constant 128 : i32
    %7 = arith.muli %arg0, %c128_i32 : i32
    %8 = tpu.iota {dimensions = array<i32: 0>} : vector<128x1xi32>
    %9 = vector.broadcast %7 : i32 to vector<128x1xi32>
    %10 = arith.addi %9, %8 : vector<128x1xi32>
    %c16_i32 = arith.constant 16 : i32
    %11 = vector.broadcast %c16_i32 : i32 to vector<128x1xi32>
    %12 = arith.cmpi slt, %10, %11 : vector<128x1xi32>
    %cst_1 = arith.constant 0.000000e+00 : f32
    %13 = vector.shape_cast %12 : vector<128x1xi1> to vector<128x1xi1>
    %14 = vector.broadcast %13 : vector<128x1xi1> to vector<128x32xi1>
    %15 = vector.broadcast %cst_1 : f32 to vector<128x32xf32>
    %16 = arith.select %14, %6, %15 : vector<128x32xi1>, vector<128x32xf32>
    %c0_2 = arith.constant 0 : index
    %c0_3 = arith.constant 0 : index
    %17 = vector.load %arg2[%c0_2, %c0_3] : memref<128x32xf32, #tpu.memory_space<vmem>>, vector<128x32xf32>
    tpu.vector_store %arg2[%c0_2, %c0_3], %16 {strides = array<i32>} : memref<128x32xf32, #tpu.memory_space<vmem>>, vector<128x32xf32>,
    return
  }
  func.func @transform_0(%arg0: i32) -> (i32, i32) {
    %c0_i32 = arith.constant 0 : i32
    %c0_i32_0 = arith.constant 0 : i32
    return %arg0, %c0_i32 : i32, i32
  }
  func.func @transform_1(%arg0: i32) -> (i32, i32) {
    %c0_i32 = arith.constant 0 : i32
    %c0_i32_0 = arith.constant 0 : i32
    return %arg0, %c0_i32 : i32, i32
  }
}

module attributes {stable_mosaic.version = 11 : i64} {
  func.func @_normalize_rows_kernel(%arg0: i32, %arg1: memref<128x32xf32, #tpu.memory_space<vmem>>, %arg2: memref<128x32xf32, #tpu.memory_space<vmem>>) attributes {dimension_semantics = [#tpu.dimension_semantics<parallel>], iteration_bounds = array<i64: 1>, scalar_prefetch = 0 : i64, scratch_operands = 0 : i64, tpu.core_type = #tpu.core_type<tc>, window_params = [{transform_indices = @transform_0, window_bounds = array<i64: 128, 32>}, {transform_indices = @transform_1, window_bounds = array<i64: 128, 32>}]} {
    %c0 = arith.constant 0 : index
    %c0_0 = arith.constant 0 : index
    %0 = vector.load %arg1[%c0, %c0_0] : memref<128x32xf32, #tpu.memory_space<vmem>>, vector<128x32xf32>
    %1 = arith.mulf %0, %0 : vector<128x32xf32>
    %cst = arith.constant dense<0.000000e+00> : vector<128xf32>
    %2 = vector.multi_reduction <add>, %1, %cst [1] : vector<128x32xf32> to vector<128xf32>
    %3 = vector.shape_cast %2 : vector<128xf32> to vector<128x1xf32>
    %4 = math.rsqrt %3 : vector<128x1xf32>
    %5 = vector.broadcast %4 : vector<128x1xf32> to vector<128x32xf32>
    %6 = arith.mulf %0, %5 : vector<128x32xf32>
    %c128_i32 = arith.constant 128 : i32
    %7 = arith.muli %arg0, %c128_i32 : i32
    %8 = tpu.iota {dimensions = array<i32: 0>} : vector<128x1xi32>
    %9 = vector.broadcast %7 : i32 to vector<128x1xi32>
    %10 = arith.addi %9, %8 : vector<128x1xi32>
    %c8_i32 = arith.constant 8 : i32
    %11 = vector.broadcast %c8_i32 : i32 to vector<128x1xi32>
    %12 = arith.cmpi slt, %10, %11 : vector<128x1xi32>
    %cst_1 = arith.constant 0.000000e+00 : f32
    %13 = vector.shape_cast %12 : vector<128x1xi1> to vector<128x1xi1>
    %14 = vector.broadcast %13 : vector<128x1xi1> to vector<128x32xi1>
    %15 = vector.broadcast %cst_1 : f32 to vector<128x32xf32>
    %16 = arith.select %14, %6, %15 : vector<128x32xi1>, vector<128x32xf32>
    %c0_2 = arith.constant 0 : index
    %c0_3 = arith.constant 0 : index
    %17 = vector.load %arg2[%c0_2, %c0_3] : memref<128x32xf32, #tpu.memory_space<vmem>>, vector<128x32xf32>
    tpu.vector_store %arg2[%c0_2, %c0_3], %16 {strides = array<i32>} : memref<128x32xf32, #tpu.memory_space<vmem>>, vector<128x32xf32>,
    return
  }
  func.func @transform_0(%arg0: i32) -> (i32, i32) {
    %c0_i32 = arith.constant 0 : i32
    %c0_i32_0 = arith.constant 0 : i32
    return %arg0, %c0_i32 : i32, i32
  }
  func.func @transform_1(%arg0: i32) -> (i32, i32) {
    %c0_i32 = arith.constant 0 : i32
    %c0_i32_0 = arith.constant 0 : i32
    return %arg0, %c0_i32 : i32, i32
  }
}

module attributes {stable_mosaic.version = 11 : i64} {
  func.func @_cross_loss_kernel(%arg0: i32, %arg1: i32, %arg2: memref<128x32xf32, #tpu.memory_space<vmem>>, %arg3: memref<128x32xf32, #tpu.memory_space<vmem>>, %arg4: memref<128x128xf32, #tpu.memory_space<vmem>>, %arg5: memref<128x128xf32, #tpu.memory_space<vmem>>, %arg6: memref<128x128xf32, #tpu.memory_space<vmem>>, %arg7: memref<1x1xf32, #tpu.memory_space<smem>>, %arg8: memref<1x1xf32, #tpu.memory_space<smem>>, %arg9: memref<1x1xf32, #tpu.memory_space<smem>>) attributes {dimension_semantics = [#tpu.dimension_semantics<parallel>, #tpu.dimension_semantics<parallel>], iteration_bounds = array<i64: 1, 1>, scalar_prefetch = 0 : i64, scratch_operands = 0 : i64, tpu.core_type = #tpu.core_type<tc>, window_params = [{transform_indices = @transform_0, window_bounds = array<i64: 128, 32>}, {transform_indices = @transform_1, window_bounds = array<i64: 128, 32>}, {transform_indices = @transform_2, window_bounds = array<i64: 128, 128>}, {transform_indices = @transform_3, window_bounds = array<i64: 128, 128>}, {transform_indices = @transform_4, window_bounds = array<i64: 128, 128>}, {transform_indices = @transform_5, window_bounds = array<i64: 1, 1>}, {transform_indices = @transform_6, window_bounds = array<i64: 1, 1>}, {transform_indices = @transform_7, window_bounds = array<i64: 1, 1>}]} {
    %c0 = arith.constant 0 : index
    %c0_0 = arith.constant 0 : index
    %0 = vector.load %arg2[%c0, %c0_0] : memref<128x32xf32, #tpu.memory_space<vmem>>, vector<128x32xf32>
    %c0_1 = arith.constant 0 : index
    %c0_2 = arith.constant 0 : index
    %1 = vector.load %arg3[%c0_1, %c0_2] : memref<128x32xf32, #tpu.memory_space<vmem>>, vector<128x32xf32>
    %cst = arith.constant dense<0.000000e+00> : vector<128x128xf32>
    %2 = tpu.matmul %0, %1, %cst {dimension_numbers = #tpu.dot_dimension_numbers<[1], [1], [0], [0], [0, 0, 1, 0], [], []>} : vector<128x32xf32>, vector<128x32xf32>, vector<128x128xf32> -> vector<128x128xf32>
    %c0_3 = arith.constant 0 : index
    %c0_4 = arith.constant 0 : index
    %3 = vector.load %arg6[%c0_3, %c0_4] : memref<128x128xf32, #tpu.memory_space<vmem>>, vector<128x128xf32>
    %4 = arith.subf %2, %3 : vector<128x128xf32>
    %5 = arith.mulf %4, %4 : vector<128x128xf32>
    %6 = vector.shape_cast %5 : vector<128x128xf32> to vector<1x128x128xf32>
    %cst_5 = arith.constant dense<0.000000e+00> : vector<1xf32>
    %7 = vector.multi_reduction <add>, %6, %cst_5 [1, 2] : vector<1x128x128xf32> to vector<1xf32>
    %8 = vector.shape_cast %7 : vector<1xf32> to vector<1x1x1xf32>
    %9 = vector.extract %8[0, 0, 0] : f32 from vector<1x1x1xf32>
    %c0_6 = arith.constant 0 : index
    %c0_7 = arith.constant 0 : index
    %10 = memref.load %arg9[%c0_6, %c0_7] : memref<1x1xf32, #tpu.memory_space<smem>>
    memref.store %9, %arg9[%c0_6, %c0_7] : memref<1x1xf32, #tpu.memory_space<smem>>
    %c0_8 = arith.constant 0 : index
    %c0_9 = arith.constant 0 : index
    %11 = vector.load %arg5[%c0_8, %c0_9] : memref<128x128xf32, #tpu.memory_space<vmem>>, vector<128x128xf32>
    %12 = vector.shape_cast %11 : vector<128x128xf32> to vector<1x128x128xf32>
    %cst_10 = arith.constant dense<0.000000e+00> : vector<1xf32>
    %13 = vector.multi_reduction <add>, %12, %cst_10 [1, 2] : vector<1x128x128xf32> to vector<1xf32>
    %14 = vector.shape_cast %13 : vector<1xf32> to vector<1x1x1xf32>
    %15 = vector.extract %14[0, 0, 0] : f32 from vector<1x1x1xf32>
    %c0_11 = arith.constant 0 : index
    %c0_12 = arith.constant 0 : index
    %16 = memref.load %arg8[%c0_11, %c0_12] : memref<1x1xf32, #tpu.memory_space<smem>>
    memref.store %15, %arg8[%c0_11, %c0_12] : memref<1x1xf32, #tpu.memory_space<smem>>
    %c0_13 = arith.constant 0 : index
    %c0_14 = arith.constant 0 : index
    %17 = vector.load %arg4[%c0_13, %c0_14] : memref<128x128xf32, #tpu.memory_space<vmem>>, vector<128x128xf32>
    %18 = arith.subf %2, %17 : vector<128x128xf32>
    %19 = arith.mulf %18, %18 : vector<128x128xf32>
    %20 = arith.mulf %19, %11 : vector<128x128xf32>
    %21 = vector.shape_cast %20 : vector<128x128xf32> to vector<1x128x128xf32>
    %cst_15 = arith.constant dense<0.000000e+00> : vector<1xf32>
    %22 = vector.multi_reduction <add>, %21, %cst_15 [1, 2] : vector<1x128x128xf32> to vector<1xf32>
    %23 = vector.shape_cast %22 : vector<1xf32> to vector<1x1x1xf32>
    %24 = vector.extract %23[0, 0, 0] : f32 from vector<1x1x1xf32>
    %c0_16 = arith.constant 0 : index
    %c0_17 = arith.constant 0 : index
    %25 = memref.load %arg7[%c0_16, %c0_17] : memref<1x1xf32, #tpu.memory_space<smem>>
    memref.store %24, %arg7[%c0_16, %c0_17] : memref<1x1xf32, #tpu.memory_space<smem>>
    return
  }
  func.func @transform_0(%arg0: i32, %arg1: i32) -> (i32, i32) {
    %c0_i32 = arith.constant 0 : i32
    %c0_i32_0 = arith.constant 0 : i32
    return %arg0, %c0_i32 : i32, i32
  }
  func.func @transform_1(%arg0: i32, %arg1: i32) -> (i32, i32) {
    %c0_i32 = arith.constant 0 : i32
    %c0_i32_0 = arith.constant 0 : i32
    return %arg1, %c0_i32 : i32, i32
  }
  func.func @transform_2(%arg0: i32, %arg1: i32) -> (i32, i32) {
    %c0_i32 = arith.constant 0 : i32
    return %arg0, %arg1 : i32, i32
  }
  func.func @transform_3(%arg0: i32, %arg1: i32) -> (i32, i32) {
    %c0_i32 = arith.constant 0 : i32
    return %arg0, %arg1 : i32, i32
  }
  func.func @transform_4(%arg0: i32, %arg1: i32) -> (i32, i32) {
    %c0_i32 = arith.constant 0 : i32
    return %arg0, %arg1 : i32, i32
  }
  func.func @transform_5(%arg0: i32, %arg1: i32) -> (i32, i32) {
    %c0_i32 = arith.constant 0 : i32
    return %arg0, %arg1 : i32, i32
  }
  func.func @transform_6(%arg0: i32, %arg1: i32) -> (i32, i32) {
    %c0_i32 = arith.constant 0 : i32
    return %arg0, %arg1 : i32, i32
  }
  func.func @transform_7(%arg0: i32, %arg1: i32) -> (i32, i32) {
    %c0_i32 = arith.constant 0 : i32
    return %arg0, %arg1 : i32, i32
  }
}

module attributes {stable_mosaic.version = 11 : i64} {
  func.func @_pair_loss_kernel(%arg0: i32, %arg1: i32, %arg2: memref<128x32xf32, #tpu.memory_space<vmem>>, %arg3: memref<128x32xf32, #tpu.memory_space<vmem>>, %arg4: memref<128x128xf32, #tpu.memory_space<vmem>>, %arg5: memref<1x1xf32, #tpu.memory_space<smem>>) attributes {dimension_semantics = [#tpu.dimension_semantics<parallel>, #tpu.dimension_semantics<parallel>], iteration_bounds = array<i64: 1, 1>, scalar_prefetch = 0 : i64, scratch_operands = 0 : i64, tpu.core_type = #tpu.core_type<tc>, window_params = [{transform_indices = @transform_0, window_bounds = array<i64: 128, 32>}, {transform_indices = @transform_1, window_bounds = array<i64: 128, 32>}, {transform_indices = @transform_2, window_bounds = array<i64: 128, 128>}, {transform_indices = @transform_3, window_bounds = array<i64: 1, 1>}]} {
    %c0 = arith.constant 0 : index
    %c0_0 = arith.constant 0 : index
    %0 = vector.load %arg2[%c0, %c0_0] : memref<128x32xf32, #tpu.memory_space<vmem>>, vector<128x32xf32>
    %c0_1 = arith.constant 0 : index
    %c0_2 = arith.constant 0 : index
    %1 = vector.load %arg3[%c0_1, %c0_2] : memref<128x32xf32, #tpu.memory_space<vmem>>, vector<128x32xf32>
    %cst = arith.constant dense<0.000000e+00> : vector<128x128xf32>
    %2 = tpu.matmul %0, %1, %cst {dimension_numbers = #tpu.dot_dimension_numbers<[1], [1], [0], [0], [0, 0, 1, 0], [], []>} : vector<128x32xf32>, vector<128x32xf32>, vector<128x128xf32> -> vector<128x128xf32>
    %c0_3 = arith.constant 0 : index
    %c0_4 = arith.constant 0 : index
    %3 = vector.load %arg4[%c0_3, %c0_4] : memref<128x128xf32, #tpu.memory_space<vmem>>, vector<128x128xf32>
    %4 = arith.subf %2, %3 : vector<128x128xf32>
    %5 = arith.mulf %4, %4 : vector<128x128xf32>
    %6 = vector.shape_cast %5 : vector<128x128xf32> to vector<1x128x128xf32>
    %cst_5 = arith.constant dense<0.000000e+00> : vector<1xf32>
    %7 = vector.multi_reduction <add>, %6, %cst_5 [1, 2] : vector<1x128x128xf32> to vector<1xf32>
    %8 = vector.shape_cast %7 : vector<1xf32> to vector<1x1x1xf32>
    %9 = vector.extract %8[0, 0, 0] : f32 from vector<1x1x1xf32>
    %c0_6 = arith.constant 0 : index
    %c0_7 = arith.constant 0 : index
    %10 = memref.load %arg5[%c0_6, %c0_7] : memref<1x1xf32, #tpu.memory_space<smem>>
    memref.store %9, %arg5[%c0_6, %c0_7] : memref<1x1xf32, #tpu.memory_space<smem>>
    return
  }
  func.func @transform_0(%arg0: i32, %arg1: i32) -> (i32, i32) {
    %c0_i32 = arith.constant 0 : i32
    %c0_i32_0 = arith.constant 0 : i32
    return %arg0, %c0_i32 : i32, i32
  }
  func.func @transform_1(%arg0: i32, %arg1: i32) -> (i32, i32) {
    %c0_i32 = arith.constant 0 : i32
    %c0_i32_0 = arith.constant 0 : i32
    return %arg1, %c0_i32 : i32, i32
  }
  func.func @transform_2(%arg0: i32, %arg1: i32) -> (i32, i32) {
    %c0_i32 = arith.constant 0 : i32
    return %arg0, %arg1 : i32, i32
  }
  func.func @transform_3(%arg0: i32, %arg1: i32) -> (i32, i32) {
    %c0_i32 = arith.constant 0 : i32
    return %arg0, %arg1 : i32, i32
  }
}

</mosaic_0001>

<bundles_post_ra>
// kernel: aefs_loss.6
= control target key start
LH: loop header
LB: loop body
LE: loop exit
PB: predicated region body
PF: predicated region fallthrough
CT: control target
= control target key end

     0   :  { %vm40_vm0 = vcmask 261120   ;;  %v245_v2 = vmov 0.0   ;;  %s328_s0 = inlined_call_operand.vmem [shape: f32[128,32], index: 0, kind: input, shape index: {}]   ;;  %s329_s1 = inlined_call_operand.vmem [shape: f32[128,32], index: 1, kind: output, shape index: {}]  }
   0x1   :  { %v8_v0 = vld [vmem:[%s328_s0] sm:$0xff]  ;;  %v9_v1 = vld [vmem:[%s328_s0 + $0x8] sm:$0xff]  ;;  %222 = vst.msk [vmem:[%s329_s1 + $0x10] sm:$0xff] %vm40_vm0, %v245_v2  ;;  %223 = vst.msk [vmem:[%s329_s1 + $0x18] sm:$0xff] %vm40_vm0, %v245_v2 }
   0x2   :  { %224 = vst.msk [vmem:[%s329_s1 + $0x20] sm:$0xff] %vm40_vm0, %v245_v2  ;;  %225 = vst.msk [vmem:[%s329_s1 + $0x28] sm:$0xff] %vm40_vm0, %v245_v2  ;;  %v24_v3 = vmul.f32 %v8_v0, %v8_v0  ;;  %v25_v4 = vmul.f32 %v9_v1, %v9_v1 }
   0x3   :  { %226 = vst.msk [vmem:[%s329_s1 + $0x30] sm:$0xff] %vm40_vm0, %v245_v2  ;;  %227 = vst.msk [vmem:[%s329_s1 + $0x38] sm:$0xff] %vm40_vm0, %v245_v2 }
   0x4   :  { %228 = vst.msk [vmem:[%s329_s1 + $0x40] sm:$0xff] %vm40_vm0, %v245_v2  ;;  %229 = vst.msk [vmem:[%s329_s1 + $0x48] sm:$0xff] %vm40_vm0, %v245_v2  ;;  %v41_v5 = vsel %vm40_vm0, %v24_v3, 0.0  ;;  %v44_v6 = vsel %vm40_vm0, %v25_v4, 0.0 }
   0x5   :  { %230 = vst.msk [vmem:[%s329_s1 + $0x50] sm:$0xff] %vm40_vm0, %v245_v2  ;;  %231 = vst.msk [vmem:[%s329_s1 + $0x58] sm:$0xff] %vm40_vm0, %v245_v2  ;;  %42 = vadd.xlane.f32.xlu0 %v41_v5 }
   0x6   :  { %232 = vst.msk [vmem:[%s329_s1 + $0x60] sm:$0xff] %vm40_vm0, %v245_v2  ;;  %233 = vst.msk [vmem:[%s329_s1 + $0x68] sm:$0xff] %vm40_vm0, %v245_v2 }
   0x7   :  { %234 = vst.msk [vmem:[%s329_s1 + $0x70] sm:$0xff] %vm40_vm0, %v245_v2  ;;  %235 = vst.msk [vmem:[%s329_s1 + $0x78] sm:$0xff] %vm40_vm0, %v245_v2 }
   0x9   :  { %45 = vadd.xlane.f32.xlu0 %v44_v6 }
  0x8e   :  { %v43_v7 = vpop.xlane.xlu0 %42 }
  0x8f   :  { %241 = vrsqrt.f32 %v43_v7 }
  0x92   :  { %v46_v8 = vpop.xlane.xlu0 %45 }
  0x93   :  { %243 = vrsqrt.f32 %v46_v8 }
  0x9c   :  { %v242_v9 = vpop.eup %241 }
  0x9d   :  { %v105_v10 = vmul.f32 %v242_v9, %v8_v0 }
  0x9f   :  { %220 = vst.msk [vmem:[%s329_s1] sm:$0xff] %vm40_vm0, %v105_v10 }
  0xa0   :  { %v244_v11 = vpop.eup %243 }
  0xa1   :  { %v106_v12 = vmul.f32 %v244_v11, %v9_v1 }
  0xa3   :  { %221 = vst.msk [vmem:[%s329_s1 + $0x8] sm:$0xff] %vm40_vm0, %v106_v12 }

// kernel: aefs_loss.5
= control target key start
LH: loop header
LB: loop body
LE: loop exit
PB: predicated region body
PF: predicated region fallthrough
CT: control target
= control target key end

     0   :  { %vm40_vm0 = vcmask 261120   ;;  %v243_v3 = vmov 0.0   ;;  %s322_s0 = inlined_call_operand.vmem [shape: f32[128,32], index: 0, kind: input, shape index: {}]   ;;  %s323_s1 = inlined_call_operand.vmem [shape: f32[128,32], index: 1, kind: output, shape index: {}]  }
   0x1   :  { %v8_v0 = vld [vmem:[%s322_s0] sm:$0xff]  ;;  %221 = vst.msk [vmem:[%s323_s1 + $0x8] sm:$0xff] %vm40_vm0, %v243_v3  ;;  %222 = vst.msk [vmem:[%s323_s1 + $0x10] sm:$0xff] %vm40_vm0, %v243_v3 }
   0x2   :  { %v24_v1 = vmul.f32 %v8_v0, %v8_v0  ;;  %223 = vst.msk [vmem:[%s323_s1 + $0x18] sm:$0xff] %vm40_vm0, %v243_v3  ;;  %224 = vst.msk [vmem:[%s323_s1 + $0x20] sm:$0xff] %vm40_vm0, %v243_v3 }
   0x3   :  { %225 = vst.msk [vmem:[%s323_s1 + $0x28] sm:$0xff] %vm40_vm0, %v243_v3  ;;  %226 = vst.msk [vmem:[%s323_s1 + $0x30] sm:$0xff] %vm40_vm0, %v243_v3 }
   0x4   :  { %v41_v2 = vsel %vm40_vm0, %v24_v1, 0.0  ;;  %227 = vst.msk [vmem:[%s323_s1 + $0x38] sm:$0xff] %vm40_vm0, %v243_v3  ;;  %228 = vst.msk [vmem:[%s323_s1 + $0x40] sm:$0xff] %vm40_vm0, %v243_v3 }
   0x5   :  { %42 = vadd.xlane.f32.xlu0 %v41_v2  ;;  %229 = vst.msk [vmem:[%s323_s1 + $0x48] sm:$0xff] %vm40_vm0, %v243_v3  ;;  %230 = vst.msk [vmem:[%s323_s1 + $0x50] sm:$0xff] %vm40_vm0, %v243_v3 }
   0x6   :  { %231 = vst.msk [vmem:[%s323_s1 + $0x58] sm:$0xff] %vm40_vm0, %v243_v3  ;;  %232 = vst.msk [vmem:[%s323_s1 + $0x60] sm:$0xff] %vm40_vm0, %v243_v3 }
   0x7   :  { %233 = vst.msk [vmem:[%s323_s1 + $0x68] sm:$0xff] %vm40_vm0, %v243_v3  ;;  %234 = vst.msk [vmem:[%s323_s1 + $0x70] sm:$0xff] %vm40_vm0, %v243_v3 }
   0x8   :  { %235 = vst.msk [vmem:[%s323_s1 + $0x78] sm:$0xff] %vm40_vm0, %v243_v3 }
  0x8e   :  { %v43_v4 = vpop.xlane.xlu0 %42 }
  0x8f   :  { %241 = vrsqrt.f32 %v43_v4 }
  0x9c   :  { %v242_v5 = vpop.eup %241 }
  0x9d   :  { %v105_v6 = vmul.f32 %v242_v5, %v8_v0 }
  0x9f   :  { %220 = vst.msk [vmem:[%s323_s1] sm:$0xff] %vm40_vm0, %v105_v6 }

// kernel: aefs_loss.9
= control target key start
LH: loop header
LB: loop body
LE: loop exit
PB: predicated region body
PF: predicated region fallthrough
CT: control target
= control target key end

     0   :  { %13 = vsyncpa [#allocation3], 0  ;;  %vm57_vm0 = vcmask 261120   ;;  %s1154_s0 = inlined_call_operand.vmem [shape: f32[128,32], index: 0, kind: input, shape index: {}]   ;;  %s1155_s1 = inlined_call_operand.vmem [shape: f32[128,32], index: 1, kind: input, shape index: {}]   ;;  %s1156_s2 = inlined_call_operand.vmem [shape: f32[128,128], index: 2, kind: input, shape index: {}]   ;;  %s1157_s3 = inlined_call_operand.vmem [shape: f32[128,128], index: 3, kind: input, shape index: {}]   ;;  %s1158_s4 = inlined_call_operand.vmem [shape: f32[128,128], index: 4, kind: input, shape index: {}]   ;;  %s1159_s5 = inlined_call_operand.hbm [shape: f32[1,1], index: 5, kind: output, shape index: {0}]   ;;  %s1160_s6 = inlined_call_operand.hbm [shape: f32[1,1], index: 6, kind: output, shape index: {1}]   ;;  %s1161_s7 = inlined_call_operand.hbm [shape: f32[1,1], index: 7, kind: output, shape index: {2}]  }
   0x1   :  { %v56_v0 = vld [vmem:[%s1155_s1 + $0x78] sm:$0xff]  ;;  %v55_v1 = vld [vmem:[%s1155_s1 + $0x70] sm:$0xff]  ;;  %v54_v2 = vld [vmem:[%s1155_s1 + $0x68] sm:$0xff] }
   0x2   :  { %605 = vmatprep.subr.msk.mxu0 %vm57_vm0, %v56_v0  ;;  %661 = vmatprep.subr.msk.mxu1 %vm57_vm0, %v56_v0  ;;  %v25_v3 = vld [vmem:[%s1154_s0] sm:$0xff] }
   0x3   :  { %606 = vmatpush3.xpose.msk.msra.mxu0 %vm57_vm0, %v56_v0  ;;  %677 = vmatpush3.xpose.msk.msra.mxu1 %vm57_vm0, %v56_v0  ;;  %v53_v4 = vld [vmem:[%s1155_s1 + $0x60] sm:$0xff] }
   0x4   :  { %607 = vmatprep.subr.msk.mxu0 %vm57_vm0, %v55_v1  ;;  %662 = vmatprep.subr.msk.mxu1 %vm57_vm0, %v55_v1  ;;  %v33_v5 = vld [vmem:[%s1154_s0 + $0x40] sm:$0xff] }
   0x5   :  { %637 = vmatprep.mubr.msk.f32.mxu0 %vm57_vm0, %v25_v3  ;;  %649 = vmatprep.mubr.msk.f32.mxu1 %vm57_vm0, %v33_v5 }
   0x7   :  { %608 = vmatpush3.xpose.msk.msra.mxu0 %vm57_vm0, %v55_v1  ;;  %678 = vmatpush3.xpose.msk.msra.mxu1 %vm57_vm0, %v55_v1 }
   0x8   :  { %609 = vmatprep.subr.msk.mxu0 %vm57_vm0, %v54_v2  ;;  %663 = vmatprep.subr.msk.mxu1 %vm57_vm0, %v54_v2 }
   0xb   :  { %610 = vmatpush3.xpose.msk.msra.mxu0 %vm57_vm0, %v54_v2  ;;  %679 = vmatpush3.xpose.msk.msra.mxu1 %vm57_vm0, %v54_v2 }
   0xc   :  { %14 = vsyncpa [#allocation5], 0  ;;  %611 = vmatprep.subr.msk.mxu0 %vm57_vm0, %v53_v4  ;;  %664 = vmatprep.subr.msk.mxu1 %vm57_vm0, %v53_v4  ;;  %v52_v6 = vld [vmem:[%s1155_s1 + $0x58] sm:$0xff]  ;;  %v51_v7 = vld [vmem:[%s1155_s1 + $0x50] sm:$0xff]  ;;  %s730_s14 = smov [#allocation4]   ;;  %s731_s17 = smov [#allocation2]  }
   0xd   :  { %v50_v8 = vld [vmem:[%s1155_s1 + $0x48] sm:$0xff]  ;;  %v49_v9 = vld [vmem:[%s1155_s1 + $0x40] sm:$0xff]  ;;  %v48_v10 = vld [vmem:[%s1155_s1 + $0x38] sm:$0xff]  ;;  %s732_s19 = smov [#allocation6]  }
   0xe   :  { %v47_v11 = vld [vmem:[%s1155_s1 + $0x30] sm:$0xff]  ;;  %v46_v12 = vld [vmem:[%s1155_s1 + $0x28] sm:$0xff]  ;;  %v45_v13 = vld [vmem:[%s1155_s1 + $0x20] sm:$0xff] }
   0xf   :  { %612 = vmatpush3.xpose.msk.msra.mxu0 %vm57_vm0, %v53_v4  ;;  %680 = vmatpush3.xpose.msk.msra.mxu1 %vm57_vm0, %v53_v4  ;;  %v44_v14 = vld [vmem:[%s1155_s1 + $0x18] sm:$0xff]  ;;  %v43_v15 = vld [vmem:[%s1155_s1 + $0x10] sm:$0xff]  ;;  %v42_v16 = vld [vmem:[%s1155_s1 + $0x8] sm:$0xff] }
  0x10   :  { %613 = vmatprep.subr.msk.mxu0 %vm57_vm0, %v52_v6  ;;  %665 = vmatprep.subr.msk.mxu1 %vm57_vm0, %v52_v6  ;;  %v41_v17 = vld [vmem:[%s1155_s1] sm:$0xff]  ;;  %v26_v18 = vld [vmem:[%s1154_s0 + $0x8] sm:$0xff]  ;;  %v27_v20 = vld [vmem:[%s1154_s0 + $0x10] sm:$0xff] }
  0x11   :  { %v34_v19 = vld [vmem:[%s1154_s0 + $0x48] sm:$0xff]  ;;  %v35_v21 = vld [vmem:[%s1154_s0 + $0x50] sm:$0xff]  ;;  %v28_v22 = vld [vmem:[%s1154_s0 + $0x18] sm:$0xff] }
  0x12   :  { %v36_v23 = vld [vmem:[%s1154_s0 + $0x58] sm:$0xff]  ;;  %v29_v24 = vld [vmem:[%s1154_s0 + $0x20] sm:$0xff]  ;;  %v30_v26 = vld [vmem:[%s1154_s0 + $0x28] sm:$0xff] }
  0x13   :  { %614 = vmatpush3.xpose.msk.msra.mxu0 %vm57_vm0, %v52_v6  ;;  %681 = vmatpush3.xpose.msk.msra.mxu1 %vm57_vm0, %v52_v6  ;;  %v37_v25 = vld [vmem:[%s1154_s0 + $0x60] sm:$0xff]  ;;  %v38_v27 = vld [vmem:[%s1154_s0 + $0x68] sm:$0xff]  ;;  %v31_v28 = vld [vmem:[%s1154_s0 + $0x30] sm:$0xff] }
  0x14   :  { %615 = vmatprep.subr.msk.mxu0 %vm57_vm0, %v51_v7  ;;  %666 = vmatprep.subr.msk.mxu1 %vm57_vm0, %v51_v7  ;;  %v39_v29 = vld [vmem:[%s1154_s0 + $0x70] sm:$0xff]  ;;  %v32_v30 = vld [vmem:[%s1154_s0 + $0x38] sm:$0xff]  ;;  %v374_v32 = vld [vmem:[%s1157_s3 + $0x8] sm:$0xff] }
  0x15   :  { %v40_v31 = vld [vmem:[%s1154_s0 + $0x78] sm:$0xff]  ;;  %v373_v33 = vld [vmem:[%s1157_s3] sm:$0xff]  ;;  %v375_v35 = vld [vmem:[%s1157_s3 + $0x10] sm:$0xff] }
  0x16   :  { %v389_v34 = vadd.f32 %v374_v32, %v373_v33  ;;  %v961_v37 = vld [vmem:[%s1157_s3 + $0x18] sm:$0xff]  ;;  %v967_v39 = vld [vmem:[%s1157_s3 + $0x20] sm:$0xff]  ;;  %v973_v41 = vld [vmem:[%s1157_s3 + $0x28] sm:$0xff] }
  0x17   :  { %616 = vmatpush3.xpose.msk.msra.mxu0 %vm57_vm0, %v51_v7  ;;  %682 = vmatpush3.xpose.msk.msra.mxu1 %vm57_vm0, %v51_v7  ;;  %v416_v43 = vld [vmem:[%s1156_s2 + $0x8] sm:$0xff]  ;;  %v982_v44 = vld [vmem:[%s1157_s3 + $0x30] sm:$0xff]  ;;  %v299_v47 = vld [vmem:[%s1158_s4] sm:$0xff] }
  0x18   :  { %617 = vmatprep.subr.msk.mxu0 %vm57_vm0, %v50_v8  ;;  %667 = vmatprep.subr.msk.mxu1 %vm57_vm0, %v50_v8  ;;  %v390_v36 = vadd.f32 %v389_v34, %v375_v35  ;;  %v300_v46 = vld [vmem:[%s1158_s4 + $0x8] sm:$0xff]  ;;  %v415_v48 = vld [vmem:[%s1156_s2] sm:$0xff]  ;;  %v418_v57 = vld [vmem:[%s1156_s2 + $0x18] sm:$0xff] }
  0x19   :  { %v1004_v58 = vld [vmem:[%s1157_s3 + $0x38] sm:$0xff]  ;;  %v301_v61 = vld [vmem:[%s1158_s4 + $0x10] sm:$0xff]  ;;  %v304_v6 = vld [vmem:[%s1158_s4 + $0x28] sm:$0xff] }
  0x1a   :  { %v391_v38 = vadd.f32 %v390_v36, %v961_v37  ;;  %v302_v60 = vld [vmem:[%s1158_s4 + $0x18] sm:$0xff]  ;;  %v417_v1 = vld [vmem:[%s1156_s2 + $0x10] sm:$0xff] }
  0x1b   :  { %618 = vmatpush3.xpose.msk.msra.mxu0 %vm57_vm0, %v50_v8  ;;  %683 = vmatpush3.xpose.msk.msra.mxu1 %vm57_vm0, %v50_v8 }
  0x1c   :  { %619 = vmatprep.subr.msk.mxu0 %vm57_vm0, %v49_v9  ;;  %668 = vmatprep.subr.msk.mxu1 %vm57_vm0, %v49_v9  ;;  %v392_v40 = vadd.f32 %v391_v38, %v967_v39 }
  0x1e   :  { %v393_v42 = vadd.f32 %v392_v40, %v973_v41  ;;  %v305_v40 = vld [vmem:[%s1158_s4 + $0x30] sm:$0xff] }
  0x1f   :  { %620 = vmatpush3.xpose.msk.msra.mxu0 %vm57_vm0, %v49_v9  ;;  %684 = vmatpush3.xpose.msk.msra.mxu1 %vm57_vm0, %v49_v9 }
  0x20   :  { %621 = vmatprep.subr.msk.mxu0 %vm57_vm0, %v48_v10  ;;  %669 = vmatprep.subr.msk.mxu1 %vm57_vm0, %v48_v10  ;;  %v394_v49 = vadd.f32 %v393_v42, %v982_v44  ;;  %v421_v42 = vld [vmem:[%s1156_s2 + $0x30] sm:$0xff] }
  0x22   :  { %v395_v62 = vadd.f32 %v394_v49, %v1004_v58 }
  0x23   :  { %622 = vmatpush3.xpose.msk.msra.mxu0 %vm57_vm0, %v48_v10  ;;  %685 = vmatpush3.xpose.msk.msra.mxu1 %vm57_vm0, %v48_v10  ;;  %v420_v10 = vld [vmem:[%s1156_s2 + $0x28] sm:$0xff] }
  0x24   :  { %623 = vmatprep.subr.msk.mxu0 %vm57_vm0, %v47_v11  ;;  %670 = vmatprep.subr.msk.mxu1 %vm57_vm0, %v47_v11 }
  0x27   :  { %624 = vmatpush3.xpose.msk.msra.mxu0 %vm57_vm0, %v47_v11  ;;  %686 = vmatpush3.xpose.msk.msra.mxu1 %vm57_vm0, %v47_v11  ;;  %v1027_v11 = vld [vmem:[%s1157_s3 + $0x40] sm:$0xff] }
  0x28   :  { %625 = vmatprep.subr.msk.mxu0 %vm57_vm0, %v46_v12  ;;  %671 = vmatprep.subr.msk.mxu1 %vm57_vm0, %v46_v12 }
  0x2b   :  { %626 = vmatpush3.xpose.msk.msra.mxu0 %vm57_vm0, %v46_v12  ;;  %687 = vmatpush3.xpose.msk.msra.mxu1 %vm57_vm0, %v46_v12 }
  0x2c   :  { %627 = vmatprep.subr.msk.mxu0 %vm57_vm0, %v45_v13  ;;  %672 = vmatprep.subr.msk.mxu1 %vm57_vm0, %v45_v13 }
  0x2f   :  { %628 = vmatpush3.xpose.msk.msra.mxu0 %vm57_vm0, %v45_v13  ;;  %688 = vmatpush3.xpose.msk.msra.mxu1 %vm57_vm0, %v45_v13 }
  0x30   :  { %629 = vmatprep.subr.msk.mxu0 %vm57_vm0, %v44_v14  ;;  %673 = vmatprep.subr.msk.mxu1 %vm57_vm0, %v44_v14 }
  0x33   :  { %630 = vmatpush3.xpose.msk.msra.mxu0 %vm57_vm0, %v44_v14  ;;  %689 = vmatpush3.xpose.msk.msra.mxu1 %vm57_vm0, %v44_v14 }
  0x34   :  { %631 = vmatprep.subr.msk.mxu0 %vm57_vm0, %v43_v15  ;;  %674 = vmatprep.subr.msk.mxu1 %vm57_vm0, %v43_v15 }
  0x37   :  { %632 = vmatpush3.xpose.msk.msra.mxu0 %vm57_vm0, %v43_v15  ;;  %690 = vmatpush3.xpose.msk.msra.mxu1 %vm57_vm0, %v43_v15  ;;  %v303_v15 = vld [vmem:[%s1158_s4 + $0x20] sm:$0xff] }
  0x38   :  { %633 = vmatprep.subr.msk.mxu0 %vm57_vm0, %v42_v16  ;;  %675 = vmatprep.subr.msk.mxu1 %vm57_vm0, %v42_v16 }
  0x3b   :  { %634 = vmatpush3.xpose.msk.msra.mxu0 %vm57_vm0, %v42_v16  ;;  %691 = vmatpush3.xpose.msk.msra.mxu1 %vm57_vm0, %v42_v16  ;;  %v396_v16 = vadd.f32 %v395_v62, %v1027_v11  ;;  %v424_v62 = vld [vmem:[%s1156_s2 + $0x48] sm:$0xff] }
  0x3c   :  { %635 = vmatprep.subr.msk.mxu0 %vm57_vm0, %v41_v17  ;;  %676 = vmatprep.subr.msk.mxu1 %vm57_vm0, %v41_v17 }
  0x3f   :  { %636 = vmatpush3.xpose.msk.msra.mxu0 %vm57_vm0, %v41_v17  ;;  %692 = vmatpush3.xpose.msk.msra.mxu1 %vm57_vm0, %v41_v17 }
  0x42   :  { %638 = vmatmul.mubr.msk.f32.vlgmr.msra.gmra.mxu0 %vm57_vm0, %v26_v18  ;;  %650 = vmatmul.mubr.msk.f32.vlgmr.msra.gmra.mxu1 %vm57_vm0, %v34_v19 }
  0x43   :  { %640 = vmatprep.mubr.msk.f32.mxu0 %vm57_vm0, %v27_v20  ;;  %652 = vmatprep.mubr.msk.f32.mxu1 %vm57_vm0, %v35_v21  ;;  %v419_v21 = vld [vmem:[%s1156_s2 + $0x20] sm:$0xff] }
  0x46   :  { %641 = vmatmul.mubr.msk.f32.gmra.mxu0 %vm57_vm0, %v28_v22  ;;  %653 = vmatmul.mubr.msk.f32.gmra.mxu1 %vm57_vm0, %v36_v23 }
  0x47   :  { %643 = vmatprep.mubr.msk.f32.mxu0 %vm57_vm0, %v29_v24  ;;  %655 = vmatprep.mubr.msk.f32.mxu1 %vm57_vm0, %v37_v25 }
  0x4a   :  { %644 = vmatmul.mubr.msk.f32.gmra.mxu0 %vm57_vm0, %v30_v26  ;;  %656 = vmatmul.mubr.msk.f32.gmra.mxu1 %vm57_vm0, %v38_v27 }
  0x4b   :  { %646 = vmatprep.mubr.msk.f32.mxu0 %vm57_vm0, %v31_v28  ;;  %658 = vmatprep.mubr.msk.f32.mxu1 %vm57_vm0, %v39_v29 }
  0x4e   :  { %647 = vmatmul.mubr.msk.f32.gmra.mxu0 %vm57_vm0, %v32_v30  ;;  %659 = vmatmul.mubr.msk.f32.gmra.mxu1 %vm57_vm0, %v40_v31  ;;  %v422_v30 = vld [vmem:[%s1156_s2 + $0x38] sm:$0xff]  ;;  %v1044_v31 = vld [vmem:[%s1157_s3 + $0x48] sm:$0xff] }
 0x102   :  { %v639_v45 = vpop.f32.mrf.mxu0  ;;  %v994_v50 = vpop.f32.mrf.mxu1 }
 0x103   :  { %v432_v51 = vsub.f32 %v639_v45, %v416_v43  ;;  %v316_v54 = vsub.f32 %v639_v45, %v300_v46  ;;  %v397_v43 = vadd.f32 %v396_v16, %v1044_v31  ;;  %v309_v16 = vld [vmem:[%s1158_s4 + $0x50] sm:$0xff] }
 0x104   :  { %v220_v52 = vpop.f32.mrf.mxu0  ;;  %v996_v53 = vpop.f32.mrf.mxu1 }
 0x105   :  { %v315_v55 = vsub.f32 %v220_v52, %v299_v47  ;;  %v431_v56 = vsub.f32 %v220_v52, %v415_v48  ;;  %v448_v3 = vmul.f32 %v432_v51, %v432_v51  ;;  %v332_v7 = vmul.f32 %v316_v54, %v316_v54  ;;  %v423_v48 = vld [vmem:[%s1156_s2 + $0x40] sm:$0xff] }
 0x106   :  { %v642_v59 = vpop.f32.mrf.mxu0  ;;  %v1016_v2 = vpop.f32.mrf.mxu1 }
 0x107   :  { %v331_v63 = vmul.f32 %v315_v55, %v315_v55  ;;  %v447_v0 = vmul.f32 %v431_v56, %v431_v56  ;;  %v434_v4 = vsub.f32 %v642_v59, %v418_v57  ;;  %v318_v8 = vsub.f32 %v642_v59, %v302_v60  ;;  %v307_v57 = vld [vmem:[%s1158_s4 + $0x40] sm:$0xff] }
 0x108   :  { %v230_v5 = vpop.f32.mrf.mxu0  ;;  %v1036_v22 = vpop.f32.mrf.mxu1  ;;  %v464_v23 = vmul.f32 %v448_v3, %v374_v32  ;;  %v306_v32 = vld [vmem:[%s1158_s4 + $0x38] sm:$0xff]  ;;  %v308_v3 = vld [vmem:[%s1158_s4 + $0x48] sm:$0xff] }
 0x109   :  { %v317_v9 = vsub.f32 %v230_v5, %v301_v61  ;;  %v463_v12 = vmul.f32 %v447_v0, %v373_v33  ;;  %v433_v13 = vsub.f32 %v230_v5, %v417_v1  ;;  %v347_v17 = vadd.f32 %v332_v7, %v331_v63  ;;  %v1071_v63 = vld [vmem:[%s1157_s3 + $0x50] sm:$0xff] }
 0x10a   :  { %v645_v14 = vpop.f32.mrf.mxu0  ;;  %v450_v18 = vmul.f32 %v434_v4, %v434_v4  ;;  %v334_v27 = vmul.f32 %v318_v8, %v318_v8  ;;  %v1060_v49 = vpop.f32.mrf.mxu1  ;;  %v439_v4 = vsub.f32 %v996_v53, %v423_v48  ;;  %v398_v5 = vadd.f32 %v397_v43, %v1071_v63 }
 0x10b   :  { %v333_v19 = vmul.f32 %v317_v9, %v317_v9  ;;  %v320_v20 = vsub.f32 %v645_v14, %v304_v6  ;;  %v449_v24 = vmul.f32 %v433_v13, %v433_v13  ;;  %v436_v25 = vsub.f32 %v645_v14, %v420_v10  ;;  %v425_v10 = vld [vmem:[%s1156_s2 + $0x50] sm:$0xff] }
 0x10c   :  { %v240_v26 = vpop.f32.mrf.mxu0  ;;  %v479_v33 = vadd.f32 %v464_v23, %v463_v12  ;;  %v466_v45 = vmul.f32 %v450_v18, %v961_v37  ;;  %v323_v9 = vsub.f32 %v996_v53, %v307_v57  ;;  %v280_v12 = vpop.f32.mrf.mxu1  ;;  %v324_v53 = vsub.f32 %v994_v50, %v308_v3  ;;  %v310_v23 = vld [vmem:[%s1158_s4 + $0x58] sm:$0xff]  ;;  %v385_v57 = vld [vmem:[%s1157_s3 + $0x60] sm:$0xff] }
 0x10d   :  { %v348_v28 = vadd.f32 %v347_v17, %v333_v19  ;;  %v319_v29 = vsub.f32 %v240_v26, %v303_v15  ;;  %v465_v34 = vmul.f32 %v449_v24, %v375_v35  ;;  %v435_v36 = vsub.f32 %v240_v26, %v419_v21 }
 0x10e   :  { %v648_v38 = vpop.f32.mrf.mxu0  ;;  %v336_v46 = vmul.f32 %v320_v20, %v320_v20  ;;  %v452_v52 = vmul.f32 %v436_v25, %v436_v25  ;;  %v440_v15 = vsub.f32 %v994_v50, %v424_v62  ;;  %v426_v20 = vld [vmem:[%s1156_s2 + $0x58] sm:$0xff]  ;;  %v441_v24 = vsub.f32 %v1036_v22, %v425_v10  ;;  %v660_v50 = vpop.f32.mrf.mxu1 }
 0x10f   :  { %v335_v35 = vmul.f32 %v319_v29, %v319_v29  ;;  %v349_v47 = vadd.f32 %v348_v28, %v334_v27  ;;  %v480_v51 = vadd.f32 %v479_v33, %v465_v34  ;;  %v451_v54 = vmul.f32 %v435_v36, %v435_v36  ;;  %v384_v33 = vld [vmem:[%s1157_s3 + $0x58] sm:$0xff]  ;;  %v311_v36 = vld [vmem:[%s1158_s4 + $0x60] sm:$0xff] }
 0x110   :  { %v438_v55 = vsub.f32 %v648_v38, %v422_v30  ;;  %v250_v56 = vpop.f32.mrf.mxu0  ;;  %v322_v37 = vsub.f32 %v648_v38, %v306_v32  ;;  %v339_v26 = vmul.f32 %v323_v9, %v323_v9  ;;  %v325_v27 = vsub.f32 %v1036_v22, %v309_v16 }
 0x111   :  { %v350_v59 = vadd.f32 %v349_v47, %v335_v35  ;;  %v321_v60 = vsub.f32 %v250_v56, %v305_v40  ;;  %v437_v61 = vsub.f32 %v250_v56, %v421_v42  ;;  %v467_v0 = vmul.f32 %v451_v54, %v967_v39 }
 0x112   :  { %v481_v1 = vadd.f32 %v480_v51, %v466_v45  ;;  %v468_v39 = vmul.f32 %v452_v52, %v973_v41  ;;  %v454_v14 = vmul.f32 %v438_v55, %v438_v55  ;;  %v338_v17 = vmul.f32 %v322_v37, %v322_v37  ;;  %v290_v52 = vpop.f32.mrf.mxu1 }
 0x113   :  { %v337_v6 = vmul.f32 %v321_v60, %v321_v60  ;;  %v351_v7 = vadd.f32 %v350_v59, %v336_v46  ;;  %v453_v8 = vmul.f32 %v437_v61, %v437_v61  ;;  %v455_v41 = vmul.f32 %v439_v4, %v439_v4  ;;  %v312_v46 = vld [vmem:[%s1158_s4 + $0x68] sm:$0xff]  ;;  %v313_v59 = vld [vmem:[%s1158_s4 + $0x70] sm:$0xff]  ;;  %v314_v4 = vld [vmem:[%s1158_s4 + $0x78] sm:$0xff] }
 0x114   :  { %v482_v13 = vadd.f32 %v481_v1, %v467_v0  ;;  %v470_v28 = vmul.f32 %v454_v14, %v1004_v58  ;;  %v456_v30 = vmul.f32 %v440_v15, %v440_v15  ;;  %v442_v34 = vsub.f32 %v1016_v2, %v426_v20  ;;  %v428_v58 = vld [vmem:[%s1156_s2 + $0x68] sm:$0xff] }
 0x115   :  { %v352_v18 = vadd.f32 %v351_v7, %v337_v6  ;;  %v469_v19 = vmul.f32 %v453_v8, %v982_v44  ;;  %v427_v44 = vld [vmem:[%s1156_s2 + $0x60] sm:$0xff]  ;;  %v340_v22 = vmul.f32 %v324_v53, %v324_v53  ;;  %v326_v32 = vsub.f32 %v1016_v2, %v310_v23  ;;  %v429_v2 = vld [vmem:[%s1156_s2 + $0x70] sm:$0xff] }
 0x116   :  { %v483_v21 = vadd.f32 %v482_v13, %v468_v39  ;;  %v399_v40 = vadd.f32 %v398_v5, %v384_v33  ;;  %v471_v43 = vmul.f32 %v455_v41, %v1027_v11  ;;  %v457_v45 = vmul.f32 %v441_v24, %v441_v24  ;;  %v387_v53 = vld [vmem:[%s1157_s3 + $0x70] sm:$0xff] }
 0x117   :  { %v353_v25 = vadd.f32 %v352_v18, %v338_v17  ;;  %v443_v35 = vsub.f32 %v280_v12, %v427_v44  ;;  %v341_v47 = vmul.f32 %v325_v27, %v325_v27  ;;  %v327_v51 = vsub.f32 %v280_v12, %v311_v36 }
 0x118   :  { %v484_v29 = vadd.f32 %v483_v21, %v469_v19  ;;  %v472_v54 = vmul.f32 %v456_v30, %v1044_v31  ;;  %v458_v56 = vmul.f32 %v442_v34, %v442_v34  ;;  %v444_v11 = vsub.f32 %v1060_v49, %v428_v58  ;;  %v430_v31 = vld [vmem:[%s1156_s2 + $0x78] sm:$0xff] }
 0x119   :  { %v354_v38 = vadd.f32 %v353_v25, %v339_v26  ;;  %v342_v37 = vmul.f32 %v326_v32, %v326_v32  ;;  %v328_v61 = vsub.f32 %v1060_v49, %v312_v46  ;;  %v400_v62 = vadd.f32 %v399_v40, %v385_v57  ;;  %v386_v49 = vld [vmem:[%s1157_s3 + $0x68] sm:$0xff]  ;;  %v388_v26 = vld [vmem:[%s1157_s3 + $0x78] sm:$0xff] }
 0x11a   :  { %v485_v42 = vadd.f32 %v484_v29, %v470_v28  ;;  %v473_v0 = vmul.f32 %v457_v45, %v1071_v63  ;;  %v459_v3 = vmul.f32 %v443_v35, %v443_v35  ;;  %v445_v5 = vsub.f32 %v290_v52, %v429_v2 }
 0x11b   :  { %v355_v48 = vadd.f32 %v354_v38, %v340_v22  ;;  %v343_v6 = vmul.f32 %v327_v51, %v327_v51  ;;  %v329_v8 = vsub.f32 %v290_v52, %v313_v59  ;;  %v474_v9 = vmul.f32 %v458_v56, %v384_v33 }
 0x11c   :  { %v486_v55 = vadd.f32 %v485_v42, %v471_v43  ;;  %v460_v12 = vmul.f32 %v444_v11, %v444_v11  ;;  %v446_v39 = vsub.f32 %v660_v50, %v430_v31  ;;  %v344_v13 = vmul.f32 %v328_v61, %v328_v61 }
 0x11d   :  { %v356_v60 = vadd.f32 %v355_v48, %v341_v47  ;;  %v330_v14 = vsub.f32 %v660_v50, %v314_v4  ;;  %v401_v15 = vadd.f32 %v400_v62, %v386_v49  ;;  %v475_v16 = vmul.f32 %v459_v3, %v385_v57 }
 0x11e   :  { %v487_v1 = vadd.f32 %v486_v55, %v472_v54  ;;  %v461_v17 = vmul.f32 %v445_v5, %v445_v5  ;;  %v345_v19 = vmul.f32 %v329_v8, %v329_v8  ;;  %v476_v21 = vmul.f32 %v460_v12, %v386_v49 }
 0x11f   :  { %v357_v7 = vadd.f32 %v356_v60, %v342_v37  ;;  %v462_v41 = vmul.f32 %v446_v39, %v446_v39  ;;  %v346_v24 = vmul.f32 %v330_v14, %v330_v14  ;;  %v402_v27 = vadd.f32 %v401_v15, %v387_v53 }
 0x120   :  { %v488_v10 = vadd.f32 %v487_v1, %v473_v0  ;;  %v477_v44 = vmul.f32 %v461_v17, %v387_v53 }
 0x121   :  { %v358_v63 = vadd.f32 %v357_v7, %v343_v6  ;;  %v478_v29 = vmul.f32 %v462_v41, %v388_v26  ;;  %v403_v33 = vadd.f32 %v402_v27, %v388_v26 }
 0x122   :  { %v489_v18 = vadd.f32 %v488_v10, %v474_v9 }
 0x123   :  { %v359_v20 = vadd.f32 %v358_v63, %v344_v13 }
 0x124   :  { %v490_v23 = vadd.f32 %v489_v18, %v475_v16 }
 0x125   :  { %v360_v25 = vadd.f32 %v359_v20, %v345_v19 }
 0x126   :  { %v491_v50 = vadd.f32 %v490_v23, %v476_v21 }
 0x127   :  { %v361_v28 = vadd.f32 %v360_v25, %v346_v24 }
 0x128   :  { %v492_v30 = vadd.f32 %v491_v50, %v477_v44 }
 0x129   :  { %362 = vadd.xlane.f32.xlu0 %v361_v28 }
 0x12a   :  { %v493_v34 = vadd.f32 %v492_v30, %v478_v29 }
 0x12c   :  { %494 = vadd.xlane.f32.xlu1 %v493_v34 }
 0x12d   :  { %404 = vadd.xlane.f32.xlu0 %v403_v33 }
 0x1b2   :  { %v363_v36 = vpop.xlane.xlu0 %362 }
 0x1b3   :  { %v364_v22 = vrot.slane %v363_v36, 4 }
 0x1b5   :  { %v365_v38 = vadd.f32 %v364_v22, %v363_v36  ;;  %v495_v32 = vpop.xlane.xlu1 %494 }
 0x1b6   :  { %v496_v58 = vrot.slane %v495_v32, 4  ;;  %v405_v40 = vpop.xlane.xlu0 %404 }
 0x1b7   :  { %v366_v42 = vrot.slane %v365_v38, 2  ;;  %v406_v43 = vrot.slane %v405_v40, 4 }
 0x1b8   :  { %v497_v45 = vadd.f32 %v496_v58, %v495_v32 }
 0x1b9   :  { %v407_v46 = vadd.f32 %v406_v43, %v405_v40  ;;  %v367_v35 = vadd.f32 %v366_v42, %v365_v38 }
 0x1ba   :  { %v498_v47 = vrot.slane %v497_v45, 2 }
 0x1bb   :  { %v408_v48 = vrot.slane %v407_v46, 2  ;;  %v368_v51 = vrot.slane %v367_v35, 1 }
 0x1bc   :  { %v499_v52 = vadd.f32 %v498_v47, %v497_v45 }
 0x1bd   :  { %v409_v2 = vadd.f32 %v408_v48, %v407_v46  ;;  %v369_v54 = vadd.f32 %v368_v51, %v367_v35 }
 0x1be   :  { %v500_v55 = vrot.slane %v499_v52, 1 }
 0x1bf   :  { %693 = vpush %v369_v54  ;;  %v410_v56 = vrot.slane %v409_v2, 1 }
 0x1c0   :  { %v501_v57 = vadd.f32 %v500_v55, %v499_v52 }
 0x1c1   :  { %v411_v11 = vadd.f32 %v410_v56, %v409_v2 }
 0x1c3   :  { %695 = vpush %v411_v11 }
 0x1c4   :  { %697 = vpush %v501_v57 }
 0x1f0   :  { %s694_s3 = spop %693 }
 0x1f1   :  { %372 = sst [smem:[#allocation6]] %s694_s3 }
 0x1f4   :  { %s696_s12 = spop %695 }
 0x1f5   :  { %414 = sst [smem:[#allocation4]] %s696_s12  ;;  %s698_s13 = spop %697 }
 0x1f6   :  { %504 = sst [smem:[#allocation2]] %s698_s13 }
 0x1f7   :  { %520 = dma.smem_to_hbm %s730_s14, 16, %s1160_s6, [#allocation5]  }
 0x1f8   :  { %512 = dma.smem_to_hbm %s731_s17, 16, %s1159_s5, [#allocation3]  }
 0x1f9   :  { %528 = dma.smem_to_hbm %s732_s19, 16, %s1161_s7, [#allocation5]  }
 0x1fa   :  { %726 = dma.done.wait [#allocation3], 16  }
 0x1fb   :  { %727 = vsyncadd [#allocation3], 4294967280 }
 0x1fc   :  { %728 = dma.done.wait [#allocation5], 32  }
 0x1fd   :  { %729 = vsyncadd [#allocation5], 4294967264 }
 0x1fe   :  { %538 = sfence }
 0x1ff   :  { %539 = vsyncpa [#allocation3], 1 }
 0x200   :  { %540 = vsyncpa [#allocation5], 1 }

// kernel: aefs_loss.7
= control target key start
LH: loop header
LB: loop body
LE: loop exit
PB: predicated region body
PF: predicated region fallthrough
CT: control target
= control target key end

     0   :  { %vm47_vm0 = vcmask 261120   ;;  %s789_s0 = inlined_call_operand.vmem [shape: f32[128,32], index: 0, kind: input, shape index: {}, may-alias: {0,1}]   ;;  %s790_s1 = inlined_call_operand.vmem [shape: f32[128,32], index: 1, kind: input, shape index: {}, may-alias: {0,1}]   ;;  %s791_s2 = inlined_call_operand.vmem [shape: f32[128,128], index: 2, kind: input, shape index: {}]   ;;  %s792_s3 = inlined_call_operand.hbm [shape: f32[1,1], index: 3, kind: output, shape index: {}]  }
   0x1   :  { %v46_v0 = vld [vmem:[%s790_s1 + $0x78] sm:$0xff]  ;;  %v45_v1 = vld [vmem:[%s790_s1 + $0x70] sm:$0xff]  ;;  %v44_v2 = vld [vmem:[%s790_s1 + $0x68] sm:$0xff] }
   0x2   :  { %440 = vmatprep.subr.msk.mxu0 %vm47_vm0, %v46_v0  ;;  %496 = vmatprep.subr.msk.mxu1 %vm47_vm0, %v46_v0  ;;  %v15_v3 = vld [vmem:[%s789_s0] sm:$0xff] }
   0x3   :  { %441 = vmatpush3.xpose.msk.msra.mxu0 %vm47_vm0, %v46_v0  ;;  %512 = vmatpush3.xpose.msk.msra.mxu1 %vm47_vm0, %v46_v0  ;;  %v43_v4 = vld [vmem:[%s790_s1 + $0x60] sm:$0xff] }
   0x4   :  { %442 = vmatprep.subr.msk.mxu0 %vm47_vm0, %v45_v1  ;;  %497 = vmatprep.subr.msk.mxu1 %vm47_vm0, %v45_v1  ;;  %v23_v5 = vld [vmem:[%s789_s0 + $0x40] sm:$0xff] }
   0x5   :  { %472 = vmatprep.mubr.msk.f32.mxu0 %vm47_vm0, %v15_v3  ;;  %484 = vmatprep.mubr.msk.f32.mxu1 %vm47_vm0, %v23_v5 }
   0x7   :  { %443 = vmatpush3.xpose.msk.msra.mxu0 %vm47_vm0, %v45_v1  ;;  %513 = vmatpush3.xpose.msk.msra.mxu1 %vm47_vm0, %v45_v1 }
   0x8   :  { %444 = vmatprep.subr.msk.mxu0 %vm47_vm0, %v44_v2  ;;  %498 = vmatprep.subr.msk.mxu1 %vm47_vm0, %v44_v2 }
   0xb   :  { %445 = vmatpush3.xpose.msk.msra.mxu0 %vm47_vm0, %v44_v2  ;;  %514 = vmatpush3.xpose.msk.msra.mxu1 %vm47_vm0, %v44_v2 }
   0xc   :  { %8 = vsyncpa [#allocation3], 0  ;;  %446 = vmatprep.subr.msk.mxu0 %vm47_vm0, %v43_v4  ;;  %499 = vmatprep.subr.msk.mxu1 %vm47_vm0, %v43_v4  ;;  %v42_v6 = vld [vmem:[%s790_s1 + $0x58] sm:$0xff]  ;;  %v41_v7 = vld [vmem:[%s790_s1 + $0x50] sm:$0xff]  ;;  %s541_s24 = smov [#allocation2]  }
   0xd   :  { %v40_v8 = vld [vmem:[%s790_s1 + $0x48] sm:$0xff]  ;;  %v39_v9 = vld [vmem:[%s790_s1 + $0x40] sm:$0xff]  ;;  %v38_v10 = vld [vmem:[%s790_s1 + $0x38] sm:$0xff] }
   0xe   :  { %v37_v11 = vld [vmem:[%s790_s1 + $0x30] sm:$0xff]  ;;  %v36_v12 = vld [vmem:[%s790_s1 + $0x28] sm:$0xff]  ;;  %v35_v13 = vld [vmem:[%s790_s1 + $0x20] sm:$0xff] }
   0xf   :  { %447 = vmatpush3.xpose.msk.msra.mxu0 %vm47_vm0, %v43_v4  ;;  %515 = vmatpush3.xpose.msk.msra.mxu1 %vm47_vm0, %v43_v4  ;;  %v34_v14 = vld [vmem:[%s790_s1 + $0x18] sm:$0xff]  ;;  %v33_v15 = vld [vmem:[%s790_s1 + $0x10] sm:$0xff]  ;;  %v32_v16 = vld [vmem:[%s790_s1 + $0x8] sm:$0xff] }
  0x10   :  { %448 = vmatprep.subr.msk.mxu0 %vm47_vm0, %v42_v6  ;;  %500 = vmatprep.subr.msk.mxu1 %vm47_vm0, %v42_v6  ;;  %v31_v17 = vld [vmem:[%s790_s1] sm:$0xff]  ;;  %v16_v18 = vld [vmem:[%s789_s0 + $0x8] sm:$0xff]  ;;  %v17_v20 = vld [vmem:[%s789_s0 + $0x10] sm:$0xff] }
  0x11   :  { %v24_v19 = vld [vmem:[%s789_s0 + $0x48] sm:$0xff]  ;;  %v25_v21 = vld [vmem:[%s789_s0 + $0x50] sm:$0xff]  ;;  %v18_v22 = vld [vmem:[%s789_s0 + $0x18] sm:$0xff] }
  0x12   :  { %v26_v23 = vld [vmem:[%s789_s0 + $0x58] sm:$0xff]  ;;  %v19_v24 = vld [vmem:[%s789_s0 + $0x20] sm:$0xff]  ;;  %v20_v26 = vld [vmem:[%s789_s0 + $0x28] sm:$0xff] }
  0x13   :  { %449 = vmatpush3.xpose.msk.msra.mxu0 %vm47_vm0, %v42_v6  ;;  %516 = vmatpush3.xpose.msk.msra.mxu1 %vm47_vm0, %v42_v6  ;;  %v27_v25 = vld [vmem:[%s789_s0 + $0x60] sm:$0xff]  ;;  %v28_v27 = vld [vmem:[%s789_s0 + $0x68] sm:$0xff]  ;;  %v21_v28 = vld [vmem:[%s789_s0 + $0x30] sm:$0xff] }
  0x14   :  { %450 = vmatprep.subr.msk.mxu0 %vm47_vm0, %v41_v7  ;;  %501 = vmatprep.subr.msk.mxu1 %vm47_vm0, %v41_v7  ;;  %v29_v29 = vld [vmem:[%s789_s0 + $0x70] sm:$0xff]  ;;  %v22_v30 = vld [vmem:[%s789_s0 + $0x38] sm:$0xff]  ;;  %v290_v33 = vld [vmem:[%s791_s2 + $0x8] sm:$0xff] }
  0x15   :  { %v30_v31 = vld [vmem:[%s789_s0 + $0x78] sm:$0xff]  ;;  %v289_v34 = vld [vmem:[%s791_s2] sm:$0xff]  ;;  %v291_v42 = vld [vmem:[%s791_s2 + $0x10] sm:$0xff] }
  0x16   :  { %v292_v41 = vld [vmem:[%s791_s2 + $0x18] sm:$0xff]  ;;  %v294_v50 = vld [vmem:[%s791_s2 + $0x28] sm:$0xff]  ;;  %v293_v51 = vld [vmem:[%s791_s2 + $0x20] sm:$0xff] }
  0x17   :  { %451 = vmatpush3.xpose.msk.msra.mxu0 %vm47_vm0, %v41_v7  ;;  %517 = vmatpush3.xpose.msk.msra.mxu1 %vm47_vm0, %v41_v7  ;;  %v296_v61 = vld [vmem:[%s791_s2 + $0x38] sm:$0xff]  ;;  %v295_v62 = vld [vmem:[%s791_s2 + $0x30] sm:$0xff]  ;;  %v297_v2 = vld [vmem:[%s791_s2 + $0x40] sm:$0xff] }
  0x18   :  { %452 = vmatprep.subr.msk.mxu0 %vm47_vm0, %v40_v8  ;;  %502 = vmatprep.subr.msk.mxu1 %vm47_vm0, %v40_v8 }
  0x1b   :  { %453 = vmatpush3.xpose.msk.msra.mxu0 %vm47_vm0, %v40_v8  ;;  %518 = vmatpush3.xpose.msk.msra.mxu1 %vm47_vm0, %v40_v8  ;;  %v298_v8 = vld [vmem:[%s791_s2 + $0x48] sm:$0xff] }
  0x1c   :  { %454 = vmatprep.subr.msk.mxu0 %vm47_vm0, %v39_v9  ;;  %503 = vmatprep.subr.msk.mxu1 %vm47_vm0, %v39_v9 }
  0x1f   :  { %455 = vmatpush3.xpose.msk.msra.mxu0 %vm47_vm0, %v39_v9  ;;  %519 = vmatpush3.xpose.msk.msra.mxu1 %vm47_vm0, %v39_v9 }
  0x20   :  { %456 = vmatprep.subr.msk.mxu0 %vm47_vm0, %v38_v10  ;;  %504 = vmatprep.subr.msk.mxu1 %vm47_vm0, %v38_v10 }
  0x23   :  { %457 = vmatpush3.xpose.msk.msra.mxu0 %vm47_vm0, %v38_v10  ;;  %520 = vmatpush3.xpose.msk.msra.mxu1 %vm47_vm0, %v38_v10 }
  0x24   :  { %458 = vmatprep.subr.msk.mxu0 %vm47_vm0, %v37_v11  ;;  %505 = vmatprep.subr.msk.mxu1 %vm47_vm0, %v37_v11 }
  0x27   :  { %459 = vmatpush3.xpose.msk.msra.mxu0 %vm47_vm0, %v37_v11  ;;  %521 = vmatpush3.xpose.msk.msra.mxu1 %vm47_vm0, %v37_v11 }
  0x28   :  { %460 = vmatprep.subr.msk.mxu0 %vm47_vm0, %v36_v12  ;;  %506 = vmatprep.subr.msk.mxu1 %vm47_vm0, %v36_v12 }
  0x2b   :  { %461 = vmatpush3.xpose.msk.msra.mxu0 %vm47_vm0, %v36_v12  ;;  %522 = vmatpush3.xpose.msk.msra.mxu1 %vm47_vm0, %v36_v12  ;;  %v299_v12 = vld [vmem:[%s791_s2 + $0x50] sm:$0xff] }
  0x2c   :  { %462 = vmatprep.subr.msk.mxu0 %vm47_vm0, %v35_v13  ;;  %507 = vmatprep.subr.msk.mxu1 %vm47_vm0, %v35_v13 }
  0x2f   :  { %463 = vmatpush3.xpose.msk.msra.mxu0 %vm47_vm0, %v35_v13  ;;  %523 = vmatpush3.xpose.msk.msra.mxu1 %vm47_vm0, %v35_v13 }
  0x30   :  { %464 = vmatprep.subr.msk.mxu0 %vm47_vm0, %v34_v14  ;;  %508 = vmatprep.subr.msk.mxu1 %vm47_vm0, %v34_v14 }
  0x33   :  { %465 = vmatpush3.xpose.msk.msra.mxu0 %vm47_vm0, %v34_v14  ;;  %524 = vmatpush3.xpose.msk.msra.mxu1 %vm47_vm0, %v34_v14 }
  0x34   :  { %466 = vmatprep.subr.msk.mxu0 %vm47_vm0, %v33_v15  ;;  %509 = vmatprep.subr.msk.mxu1 %vm47_vm0, %v33_v15 }
  0x37   :  { %467 = vmatpush3.xpose.msk.msra.mxu0 %vm47_vm0, %v33_v15  ;;  %525 = vmatpush3.xpose.msk.msra.mxu1 %vm47_vm0, %v33_v15 }
  0x38   :  { %468 = vmatprep.subr.msk.mxu0 %vm47_vm0, %v32_v16  ;;  %510 = vmatprep.subr.msk.mxu1 %vm47_vm0, %v32_v16 }
  0x3b   :  { %469 = vmatpush3.xpose.msk.msra.mxu0 %vm47_vm0, %v32_v16  ;;  %526 = vmatpush3.xpose.msk.msra.mxu1 %vm47_vm0, %v32_v16 }
  0x3c   :  { %470 = vmatprep.subr.msk.mxu0 %vm47_vm0, %v31_v17  ;;  %511 = vmatprep.subr.msk.mxu1 %vm47_vm0, %v31_v17 }
  0x3f   :  { %471 = vmatpush3.xpose.msk.msra.mxu0 %vm47_vm0, %v31_v17  ;;  %527 = vmatpush3.xpose.msk.msra.mxu1 %vm47_vm0, %v31_v17  ;;  %v300_v17 = vld [vmem:[%s791_s2 + $0x58] sm:$0xff] }
  0x42   :  { %473 = vmatmul.mubr.msk.f32.vlgmr.msra.gmra.mxu0 %vm47_vm0, %v16_v18  ;;  %485 = vmatmul.mubr.msk.f32.vlgmr.msra.gmra.mxu1 %vm47_vm0, %v24_v19 }
  0x43   :  { %475 = vmatprep.mubr.msk.f32.mxu0 %vm47_vm0, %v17_v20  ;;  %487 = vmatprep.mubr.msk.f32.mxu1 %vm47_vm0, %v25_v21  ;;  %v301_v21 = vld [vmem:[%s791_s2 + $0x60] sm:$0xff] }
  0x46   :  { %476 = vmatmul.mubr.msk.f32.gmra.mxu0 %vm47_vm0, %v18_v22  ;;  %488 = vmatmul.mubr.msk.f32.gmra.mxu1 %vm47_vm0, %v26_v23 }
  0x47   :  { %478 = vmatprep.mubr.msk.f32.mxu0 %vm47_vm0, %v19_v24  ;;  %490 = vmatprep.mubr.msk.f32.mxu1 %vm47_vm0, %v27_v25 }
  0x4a   :  { %479 = vmatmul.mubr.msk.f32.gmra.mxu0 %vm47_vm0, %v20_v26  ;;  %491 = vmatmul.mubr.msk.f32.gmra.mxu1 %vm47_vm0, %v28_v27  ;;  %v302_v26 = vld [vmem:[%s791_s2 + $0x68] sm:$0xff] }
  0x4b   :  { %481 = vmatprep.mubr.msk.f32.mxu0 %vm47_vm0, %v21_v28  ;;  %493 = vmatprep.mubr.msk.f32.mxu1 %vm47_vm0, %v29_v29 }
  0x4e   :  { %482 = vmatmul.mubr.msk.f32.gmra.mxu0 %vm47_vm0, %v22_v30  ;;  %494 = vmatmul.mubr.msk.f32.gmra.mxu1 %vm47_vm0, %v30_v31  ;;  %v303_v31 = vld [vmem:[%s791_s2 + $0x70] sm:$0xff] }
 0x102   :  { %v474_v32 = vpop.f32.mrf.mxu0  ;;  %v486_v35 = vpop.f32.mrf.mxu1 }
 0x103   :  { %v306_v38 = vsub.f32 %v474_v32, %v290_v33  ;;  %v314_v16 = vsub.f32 %v486_v35, %v298_v8  ;;  %v304_v35 = vld [vmem:[%s791_s2 + $0x78] sm:$0xff] }
 0x104   :  { %v210_v36 = vpop.f32.mrf.mxu0  ;;  %v250_v37 = vpop.f32.mrf.mxu1 }
 0x105   :  { %v305_v39 = vsub.f32 %v210_v36, %v289_v34  ;;  %v322_v46 = vmul.f32 %v306_v38, %v306_v38  ;;  %v313_v11 = vsub.f32 %v250_v37, %v297_v2  ;;  %v330_v23 = vmul.f32 %v314_v16, %v314_v16 }
 0x106   :  { %v477_v40 = vpop.f32.mrf.mxu0  ;;  %v489_v45 = vpop.f32.mrf.mxu1 }
 0x107   :  { %v321_v43 = vmul.f32 %v305_v39, %v305_v39  ;;  %v308_v47 = vsub.f32 %v477_v40, %v292_v41  ;;  %v329_v18 = vmul.f32 %v313_v11, %v313_v11  ;;  %v316_v25 = vsub.f32 %v489_v45, %v300_v17 }
 0x108   :  { %v220_v44 = vpop.f32.mrf.mxu0  ;;  %v260_v55 = vpop.f32.mrf.mxu1 }
 0x109   :  { %v307_v48 = vsub.f32 %v220_v44, %v291_v42  ;;  %v337_v52 = vadd.f32 %v322_v46, %v321_v43  ;;  %v324_v56 = vmul.f32 %v308_v47, %v308_v47  ;;  %v315_v20 = vsub.f32 %v260_v55, %v299_v12 }
 0x10a   :  { %v480_v49 = vpop.f32.mrf.mxu0  ;;  %v492_v3 = vpop.f32.mrf.mxu1  ;;  %v332_v32 = vmul.f32 %v316_v25, %v316_v25 }
 0x10b   :  { %v323_v53 = vmul.f32 %v307_v48, %v307_v48  ;;  %v310_v58 = vsub.f32 %v480_v49, %v294_v50  ;;  %v331_v27 = vmul.f32 %v315_v20, %v315_v20  ;;  %v318_v34 = vsub.f32 %v492_v3, %v302_v26 }
 0x10c   :  { %v230_v54 = vpop.f32.mrf.mxu0  ;;  %v270_v13 = vpop.f32.mrf.mxu1 }
 0x10d   :  { %v338_v57 = vadd.f32 %v337_v52, %v323_v53  ;;  %v309_v59 = vsub.f32 %v230_v54, %v293_v51  ;;  %v326_v4 = vmul.f32 %v310_v58, %v310_v58  ;;  %v317_v29 = vsub.f32 %v270_v13, %v301_v21 }
 0x10e   :  { %v483_v60 = vpop.f32.mrf.mxu0  ;;  %v495_v22 = vpop.f32.mrf.mxu1  ;;  %v334_v39 = vmul.f32 %v318_v34, %v318_v34 }
 0x10f   :  { %v325_v63 = vmul.f32 %v309_v59, %v309_v59  ;;  %v339_v0 = vadd.f32 %v338_v57, %v324_v56  ;;  %v312_v6 = vsub.f32 %v483_v60, %v296_v61  ;;  %v333_v36 = vmul.f32 %v317_v29, %v317_v29 }
 0x110   :  { %v240_v1 = vpop.f32.mrf.mxu0  ;;  %v280_v30 = vpop.f32.mrf.mxu1  ;;  %v320_v41 = vsub.f32 %v495_v22, %v304_v35 }
 0x111   :  { %v340_v5 = vadd.f32 %v339_v0, %v325_v63  ;;  %v311_v7 = vsub.f32 %v240_v1, %v295_v62  ;;  %v328_v14 = vmul.f32 %v312_v6, %v312_v6  ;;  %v319_v38 = vsub.f32 %v280_v30, %v303_v31 }
 0x112   :  { %v336_v44 = vmul.f32 %v320_v41, %v320_v41 }
 0x113   :  { %v327_v9 = vmul.f32 %v311_v7, %v311_v7  ;;  %v341_v10 = vadd.f32 %v340_v5, %v326_v4  ;;  %v335_v42 = vmul.f32 %v319_v38, %v319_v38 }
 0x115   :  { %v342_v15 = vadd.f32 %v341_v10, %v327_v9 }
 0x117   :  { %v343_v19 = vadd.f32 %v342_v15, %v328_v14 }
 0x119   :  { %v344_v24 = vadd.f32 %v343_v19, %v329_v18 }
 0x11b   :  { %v345_v28 = vadd.f32 %v344_v24, %v330_v23 }
 0x11d   :  { %v346_v33 = vadd.f32 %v345_v28, %v331_v27 }
 0x11f   :  { %v347_v37 = vadd.f32 %v346_v33, %v332_v32 }
 0x121   :  { %v348_v40 = vadd.f32 %v347_v37, %v333_v36 }
 0x123   :  { %v349_v43 = vadd.f32 %v348_v40, %v334_v39 }
 0x125   :  { %v350_v45 = vadd.f32 %v349_v43, %v335_v42 }
 0x127   :  { %v351_v46 = vadd.f32 %v350_v45, %v336_v44 }
 0x129   :  { %352 = vadd.xlane.f32.xlu0 %v351_v46 }
 0x1b2   :  { %v353_v47 = vpop.xlane.xlu0 %352 }
 0x1b3   :  { %v354_v48 = vrot.slane %v353_v47, 4 }
 0x1b5   :  { %v355_v49 = vadd.f32 %v354_v48, %v353_v47 }
 0x1b7   :  { %v356_v50 = vrot.slane %v355_v49, 2 }
 0x1b9   :  { %v357_v51 = vadd.f32 %v356_v50, %v355_v49 }
 0x1bb   :  { %v358_v52 = vrot.slane %v357_v51, 1 }
 0x1bd   :  { %v359_v53 = vadd.f32 %v358_v52, %v357_v51 }
 0x1bf   :  { %528 = vpush %v359_v53 }
 0x1f0   :  { %s529_s2 = spop %528 }
 0x1f1   :  { %362 = sst [smem:[#allocation2]] %s529_s2 }
 0x1f2   :  { %370 = dma.smem_to_hbm %s541_s24, 16, %s792_s3, [#allocation3]  }
 0x1f3   :  { %539 = dma.done.wait [#allocation3], 16  }
 0x1f4   :  { %540 = vsyncadd [#allocation3], 4294967280 }
 0x1f5   :  { %374 = sfence }
 0x1f6   :  { %375 = vsyncpa [#allocation3], 1 }

</bundles_post_ra>
